<compile_context>
chip_gen: v7x
topology: tpu7x:2x2x1
jax: 0.10.0
libtpu: 0.0.40
codegen_flags: <defaults>
</compile_context>

<pallas_src>
import functools

import jax
import jax.numpy as jnp
from jax.experimental import pallas as pl
from jax.experimental.pallas import tpu as pltpu


def _round_up(n, m):
    return ((n + m - 1) // m) * m


def _cdiv(a, b):
    return (a + b - 1) // b


MAX_TILE_B = 2048          # ~1.7 MB of activation DMA per grid step after byte trimming


def rnn_agent_kernel(x_ref, h_ref,
                     w1_ref, b1_ref,
                     wgx_ref, wgh_ref, bg_ref,
                     w2_ref, b2_ref,
                     q_ref, hout_ref,
                     *, h_dim, hp):
    H, HP = h_dim, hp

    x = x_ref[...]                       # (TB, IP)  bf16 (pre-cast in wrapper)
    h_f32 = h_ref[...]                   # (TB, H)   f32 recurrent carry
    h_bf = h_f32.astype(jnp.bfloat16)

    # ---- fc1 + ReLU (K=IP, N=HP, f32 accumulate) ----
    x1 = jnp.dot(x, w1_ref[...], preferred_element_type=jnp.float32) + b1_ref[...]
    x1 = jnp.maximum(x1, 0.0)            # padded cols stay exactly 0

    # ---- fused GRU matmuls: two MXU pushes into one f32 gate slab ----
    # columns: [r_sum | z_sum | i_n | h_n], each HP wide (useful data in first H lanes)
    g = (jnp.dot(x1.astype(jnp.bfloat16), wgx_ref[...],
                 preferred_element_type=jnp.float32)
         + jnp.dot(h_bf, wgh_ref[...], preferred_element_type=jnp.float32)
         + bg_ref[...])

    rz = jax.nn.sigmoid(g[:, 0:2 * HP])  # one 256-lane EUP slab covers r and z
    r = rz[:, 0:H]
    z = rz[:, HP:HP + H]
    i_n = g[:, 2 * HP:2 * HP + H]
    h_n = g[:, 3 * HP:3 * HP + H]
    n = jnp.tanh(i_n + r * h_n)
    h_new = (1.0 - z) * n + z * h_f32    # (TB, H) f32

    # ---- fc2 (K=H, N=num_actions) ----
    q = jnp.dot(h_new.astype(jnp.bfloat16), w2_ref[...],
                preferred_element_type=jnp.float32) + b2_ref[...]

    q_ref[...] = q
    hout_ref[...] = h_new


def prepare_params(params, *, input_shape, hidden_dim, num_actions):
    """One-time weight prep: pad / fuse gates / transpose / cast to bf16.

    Call once per parameter update; reuse the result for every forward step.
    """
    H = hidden_dim
    IP = _round_up(input_shape, 128)
    HP = _round_up(H, 128)
    f32, bf16 = jnp.float32, jnp.bfloat16

    w1 = jnp.zeros((IP, HP), f32).at[:input_shape, :H].set(params["fc1_w"].T)
    b1 = jnp.zeros((1, HP), f32).at[0, :H].set(params["fc1_b"])

    wih, whh = params["gru_wih"], params["gru_whh"]          # (3H, H) torch layout
    bih, bhh = params["gru_bih"], params["gru_bhh"]
    Wir, Wiz, Win = wih[:H], wih[H:2 * H], wih[2 * H:]
    Whr, Whz, Whn = whh[:H], whh[H:2 * H], whh[2 * H:]
    bir, biz, bin_ = bih[:H], bih[H:2 * H], bih[2 * H:]
    bhr, bhz, bhn = bhh[:H], bhh[H:2 * H], bhh[2 * H:]

    # x-side gate weight (K = HP): rows H:HP are zero (x1's padded cols are zero).
    wgx = jnp.zeros((HP, 4 * HP), f32)
    wgx = wgx.at[:H, 0 * HP:0 * HP + H].set(Wir.T)
    wgx = wgx.at[:H, 1 * HP:1 * HP + H].set(Wiz.T)
    wgx = wgx.at[:H, 2 * HP:2 * HP + H].set(Win.T)

    # h-side gate weight (K = H, unpadded — h streams at its logical 64-lane width).
    wgh = jnp.zeros((H, 4 * HP), f32)
    wgh = wgh.at[:, 0 * HP:0 * HP + H].set(Whr.T)
    wgh = wgh.at[:, 1 * HP:1 * HP + H].set(Whz.T)
    wgh = wgh.at[:, 3 * HP:3 * HP + H].set(Whn.T)

    bg = jnp.zeros((1, 4 * HP), f32)
    bg = bg.at[0, 0 * HP:0 * HP + H].set(bir + bhr)   # r bias folded
    bg = bg.at[0, 1 * HP:1 * HP + H].set(biz + bhz)   # z bias folded
    bg = bg.at[0, 2 * HP:2 * HP + H].set(bin_)        # n-gate input bias
    bg = bg.at[0, 3 * HP:3 * HP + H].set(bhn)         # n-gate hidden bias (scaled by r)

    w2 = params["fc2_w"].T.astype(bf16)               # (H, num_actions)
    b2 = params["fc2_b"].reshape(1, num_actions).astype(f32)

    return {
        "w1": w1.astype(bf16), "b1": b1,
        "wgx": wgx.astype(bf16), "wgh": wgh.astype(bf16), "bg": bg,
        "w2": w2, "b2": b2,
        "input_shape": input_shape, "hidden_dim": H, "num_actions": num_actions,
        "IP": IP, "HP": HP,
    }


def rnn_agent_forward(inputs, hidden_state, prep):
    """inputs: (B, input_shape) f32; hidden_state: (..., hidden_dim) f32.

    `prep` is the output of prepare_params (weights already padded/fused/bf16).
    """
    input_shape = prep["input_shape"]
    H = prep["hidden_dim"]
    A = prep["num_actions"]
    IP, HP = prep["IP"], prep["HP"]

    B = inputs.shape[0]
    h_in = hidden_state.reshape(-1, H)

    # Batch tiling: big tiles (amortize ~0.35us/grid-step overhead), last tile not
    # mostly padding, and >= 2 tiles when possible so v7x megacore has work.
    num_chunks = _cdiv(B, MAX_TILE_B)
    if B >= 16:
        num_chunks = max(num_chunks, 2)
    TILE_B = _round_up(_cdiv(B, num_chunks), 8)
    B_pad = _round_up(B, TILE_B)
    num_tiles = B_pad // TILE_B

    f32, bf16 = jnp.float32, jnp.bfloat16

    # ---- pad activations only (weights prepped once, outside) ----
    if B_pad == B and IP == input_shape:
        x_p = inputs.astype(bf16)
    else:
        x_p = jnp.zeros((B_pad, IP), bf16).at[:B, :input_shape].set(
            inputs.astype(bf16))
    if B_pad == B:
        h_p = h_in.astype(f32)
    else:
        h_p = jnp.zeros((B_pad, H), f32).at[:B, :].set(h_in)

    kernel = functools.partial(rnn_agent_kernel, h_dim=H, hp=HP)
    const = lambda i: (0, 0)   # weights: same block every grid step (VMEM resident)
    tiled = lambda i: (i, 0)   # activations: tile the batch axis

    grid_spec = pltpu.PrefetchScalarGridSpec(
        num_scalar_prefetch=0,
        grid=(num_tiles,),
        in_specs=[
            pl.BlockSpec((TILE_B, IP), tiled),       # x (bf16)
            pl.BlockSpec((TILE_B, H), tiled),        # h (f32, full-last-dim block)
            pl.BlockSpec((IP, HP), const),           # w1
            pl.BlockSpec((1, HP), const),            # b1
            pl.BlockSpec((HP, 4 * HP), const),       # fused GRU weight, x side
            pl.BlockSpec((H, 4 * HP), const),        # fused GRU weight, h side
            pl.BlockSpec((1, 4 * HP), const),        # fused GRU bias
            pl.BlockSpec((H, A), const),             # w2 (narrow, unpadded)
            pl.BlockSpec((1, A), const),             # b2
        ],
        out_specs=(
            pl.BlockSpec((TILE_B, A), tiled),        # q   (full-last-dim block)
            pl.BlockSpec((TILE_B, H), tiled),        # h'  (full-last-dim block)
        ),
    )

    q_p, h_out_p = pl.pallas_call(
        kernel,
        out_shape=(
            jax.ShapeDtypeStruct((B_pad, A), f32),
            jax.ShapeDtypeStruct((B_pad, H), f32),
        ),
        grid_spec=grid_spec,
        compiler_params=pltpu.CompilerParams(
            dimension_semantics=("parallel",),
            vmem_limit_bytes=48 * 1024 * 1024,   # large tiles fit v5e's 16 MiB default otherwise not
        ),
    )(x_p, h_p, prep["w1"], prep["b1"], prep["wgx"], prep["wgh"], prep["bg"],
      prep["w2"], prep["b2"])

    if B_pad == B:
        return q_p, h_out_p
    return q_p[:B], h_out_p[:B]


def init_params(key, input_shape, hidden_dim, num_actions):
    """Deterministic synthetic init mirroring the torch module's parameter shapes."""
    ks = jax.random.split(key, 8)
    u = lambda k, shape, scale: jax.random.uniform(k, shape, jnp.float32, -scale, scale)
    s_fc1 = 1.0 / jnp.sqrt(input_shape)
    s_gru = 1.0 / jnp.sqrt(hidden_dim)
    s_fc2 = 1.0 / jnp.sqrt(hidden_dim)
    return {
        "fc1_w": u(ks[0], (hidden_dim, input_shape), s_fc1),
        "fc1_b": u(ks[1], (hidden_dim,), s_fc1),
        "gru_wih": u(ks[2], (3 * hidden_dim, hidden_dim), s_gru),
        "gru_bih": u(ks[3], (3 * hidden_dim,), s_gru),
        "gru_whh": u(ks[4], (3 * hidden_dim, hidden_dim), s_gru),
        "gru_bhh": u(ks[5], (3 * hidden_dim,), s_gru),
        "fc2_w": u(ks[6], (num_actions, hidden_dim), s_fc2),
        "fc2_b": u(ks[7], (num_actions,), s_fc2),
    }


if __name__ == "__main__":
    input_shape = 48     # per-agent observation size
    hidden_dim = 64
    num_actions = 16

    key = jax.random.PRNGKey(0)
    k_in, k_h, k_p, k_in2, k_h2 = jax.random.split(key, 5)

    params = init_params(k_p, input_shape, hidden_dim, num_actions)
    # One-time weight prep (hoisted out of the per-step forward).
    prep = prepare_params(params, input_shape=input_shape,
                          hidden_dim=hidden_dim, num_actions=num_actions)

    # Pure-JAX f32 reference of Linear/GRUCell/Linear semantics.
    def ref(inputs, h_in, p):
        x = jax.nn.relu(inputs @ p["fc1_w"].T + p["fc1_b"])
        gi = x @ p["gru_wih"].T + p["gru_bih"]
        gh = h_in @ p["gru_whh"].T + p["gru_bhh"]
        H = hidden_dim
        r = jax.nn.sigmoid(gi[:, :H] + gh[:, :H])
        z = jax.nn.sigmoid(gi[:, H:2 * H] + gh[:, H:2 * H])
        n = jnp.tanh(gi[:, 2 * H:] + r * gh[:, 2 * H:])
        h_new = (1 - z) * n + z * h_in
        q = h_new @ p["fc2_w"].T + p["fc2_b"]
        return q, h_new

    # --- run 1: tiny batch (single tile path) ---
    batch = 8
    inputs = jax.random.normal(k_in, (batch, input_shape), jnp.float32)
    hidden_state = jax.random.normal(k_h, (batch, hidden_dim), jnp.float32)
    q, h = rnn_agent_forward(inputs, hidden_state, prep)
    jax.block_until_ready((q, h))
    q_ref, h_ref = ref(inputs, hidden_state, params)
    assert q.shape == (batch, num_actions) and h.shape == (batch, hidden_dim)
    assert jnp.allclose(q, q_ref, atol=2e-2, rtol=2e-2), "q mismatch (batch=8)"
    assert jnp.allclose(h, h_ref, atol=2e-2, rtol=2e-2), "h mismatch (batch=8)"

    # --- run 2: exercises multi-tile grid + batch padding, reusing prepared weights ---
    batch2 = 300
    inputs2 = jax.random.normal(k_in2, (batch2, input_shape), jnp.float32)
    hidden_state2 = jax.random.normal(k_h2, (batch2, hidden_dim), jnp.float32)
    q2, h2 = rnn_agent_forward(inputs2, hidden_state2, prep)
    jax.block_until_ready((q2, h2))
    q2_ref, h2_ref = ref(inputs2, hidden_state2, params)
    assert q2.shape == (batch2, num_actions) and h2.shape == (batch2, hidden_dim)
    assert jnp.allclose(q2, q2_ref, atol=2e-2, rtol=2e-2), "q mismatch (batch=300)"
    assert jnp.allclose(h2, h2_ref, atol=2e-2, rtol=2e-2), "h mismatch (batch=300)"

    print("KERNEL_OK")
</pallas_src>

<mosaic_0001>
module attributes {stable_mosaic.version = 11 : i64} {
  func.func @rnn_agent_kernel(%arg0: i32, %arg1: memref<8x128xbf16, #tpu.memory_space<vmem>>, %arg2: memref<8x64xf32, #tpu.memory_space<vmem>>, %arg3: memref<128x128xbf16, #tpu.memory_space<vmem>>, %arg4: memref<1x128xf32, #tpu.memory_space<vmem>>, %arg5: memref<128x512xbf16, #tpu.memory_space<vmem>>, %arg6: memref<64x512xbf16, #tpu.memory_space<vmem>>, %arg7: memref<1x512xf32, #tpu.memory_space<vmem>>, %arg8: memref<64x16xbf16, #tpu.memory_space<vmem>>, %arg9: memref<1x16xf32, #tpu.memory_space<vmem>>, %arg10: memref<8x16xf32, #tpu.memory_space<vmem>>, %arg11: memref<8x64xf32, #tpu.memory_space<vmem>>) attributes {dimension_semantics = [#tpu.dimension_semantics<parallel>], iteration_bounds = array<i64: 1>, scalar_prefetch = 0 : i64, scratch_operands = 0 : i64, tpu.core_type = #tpu.core_type<tc>, window_params = [{transform_indices = @transform_0, window_bounds = array<i64: 8, 128>}, {transform_indices = @transform_1, window_bounds = array<i64: 8, 64>}, {pipeline_mode = #tpu.pipeline_mode<synchronous>, transform_indices = @transform_2, window_bounds = array<i64: 128, 128>}, {pipeline_mode = #tpu.pipeline_mode<synchronous>, transform_indices = @transform_3, window_bounds = array<i64: 1, 128>}, {pipeline_mode = #tpu.pipeline_mode<synchronous>, transform_indices = @transform_4, window_bounds = array<i64: 128, 512>}, {pipeline_mode = #tpu.pipeline_mode<synchronous>, transform_indices = @transform_5, window_bounds = array<i64: 64, 512>}, {pipeline_mode = #tpu.pipeline_mode<synchronous>, transform_indices = @transform_6, window_bounds = array<i64: 1, 512>}, {pipeline_mode = #tpu.pipeline_mode<synchronous>, transform_indices = @transform_7, window_bounds = array<i64: 64, 16>}, {pipeline_mode = #tpu.pipeline_mode<synchronous>, transform_indices = @transform_8, window_bounds = array<i64: 1, 16>}, {transform_indices = @transform_9, window_bounds = array<i64: 8, 16>}, {transform_indices = @transform_10, window_bounds = array<i64: 8, 64>}]} {
    %c0 = arith.constant 0 : index
    %c0_0 = arith.constant 0 : index
    %0 = vector.load %arg1[%c0, %c0_0] : memref<8x128xbf16, #tpu.memory_space<vmem>>, vector<8x128xbf16>
    %c0_1 = arith.constant 0 : index
    %c0_2 = arith.constant 0 : index
    %1 = vector.load %arg2[%c0_1, %c0_2] : memref<8x64xf32, #tpu.memory_space<vmem>>, vector<8x64xf32>
    %2 = arith.truncf %1 : vector<8x64xf32> to vector<8x64xbf16>
    %c0_3 = arith.constant 0 : index
    %c0_4 = arith.constant 0 : index
    %3 = vector.load %arg3[%c0_3, %c0_4] : memref<128x128xbf16, #tpu.memory_space<vmem>>, vector<128x128xbf16>
    %cst = arith.constant dense<0.000000e+00> : vector<8x128xf32>
    %4 = tpu.matmul %0, %3, %cst {dimension_numbers = #tpu.dot_dimension_numbers<[1], [0], [0], [1], [0, 0, 1, 1], [], []>} : vector<8x128xbf16>, vector<128x128xbf16>, vector<8x128xf32> -> vector<8x128xf32>
    %c0_5 = arith.constant 0 : index
    %c0_6 = arith.constant 0 : index
    %5 = vector.load %arg4[%c0_5, %c0_6] : memref<1x128xf32, #tpu.memory_space<vmem>>, vector<1x128xf32>
    %6 = vector.broadcast %5 : vector<1x128xf32> to vector<8x128xf32>
    %7 = arith.addf %4, %6 : vector<8x128xf32>
    %cst_7 = arith.constant 0.000000e+00 : f32
    %8 = vector.broadcast %cst_7 : f32 to vector<8x128xf32>
    %9 = arith.maximumf %7, %8 : vector<8x128xf32>
    %10 = arith.truncf %9 : vector<8x128xf32> to vector<8x128xbf16>
    %c0_8 = arith.constant 0 : index
    %c0_9 = arith.constant 0 : index
    %11 = vector.load %arg5[%c0_8, %c0_9] : memref<128x512xbf16, #tpu.memory_space<vmem>>, vector<128x512xbf16>
    %cst_10 = arith.constant dense<0.000000e+00> : vector<8x512xf32>
    %12 = tpu.matmul %10, %11, %cst_10 {dimension_numbers = #tpu.dot_dimension_numbers<[1], [0], [0], [1], [0, 0, 1, 1], [], []>} : vector<8x128xbf16>, vector<128x512xbf16>, vector<8x512xf32> -> vector<8x512xf32>
    %c0_11 = arith.constant 0 : index
    %c0_12 = arith.constant 0 : index
    %13 = vector.load %arg6[%c0_11, %c0_12] : memref<64x512xbf16, #tpu.memory_space<vmem>>, vector<64x512xbf16>
    %cst_13 = arith.constant dense<0.000000e+00> : vector<8x512xf32>
    %14 = tpu.matmul %2, %13, %cst_13 {dimension_numbers = #tpu.dot_dimension_numbers<[1], [0], [0], [1], [0, 0, 1, 1], [], []>} : vector<8x64xbf16>, vector<64x512xbf16>, vector<8x512xf32> -> vector<8x512xf32>
    %15 = arith.addf %12, %14 : vector<8x512xf32>
    %c0_14 = arith.constant 0 : index
    %c0_15 = arith.constant 0 : index
    %16 = vector.load %arg7[%c0_14, %c0_15] : memref<1x512xf32, #tpu.memory_space<vmem>>, vector<1x512xf32>
    %17 = vector.broadcast %16 : vector<1x512xf32> to vector<8x512xf32>
    %18 = arith.addf %15, %17 : vector<8x512xf32>
    %19 = vector.extract_strided_slice %18 {offsets = [0, 0], sizes = [8, 256], strides = [1, 1]} : vector<8x512xf32> to vector<8x256xf32>
    %20 = arith.negf %19 : vector<8x256xf32>
    %21 = math.exp %20 : vector<8x256xf32>
    %cst_16 = arith.constant 1.000000e+00 : f32
    %22 = vector.broadcast %cst_16 : f32 to vector<8x256xf32>
    %23 = arith.addf %22, %21 : vector<8x256xf32>
    %24 = arith.divf %22, %23 : vector<8x256xf32>
    %25 = vector.extract_strided_slice %24 {offsets = [0, 0], sizes = [8, 64], strides = [1, 1]} : vector<8x256xf32> to vector<8x64xf32>
    %26 = vector.extract_strided_slice %24 {offsets = [0, 128], sizes = [8, 64], strides = [1, 1]} : vector<8x256xf32> to vector<8x64xf32>
    %27 = vector.extract_strided_slice %18 {offsets = [0, 256], sizes = [8, 64], strides = [1, 1]} : vector<8x512xf32> to vector<8x64xf32>
    %28 = vector.extract_strided_slice %18 {offsets = [0, 384], sizes = [8, 64], strides = [1, 1]} : vector<8x512xf32> to vector<8x64xf32>
    %29 = arith.mulf %25, %28 : vector<8x64xf32>
    %30 = arith.addf %27, %29 : vector<8x64xf32>
    %31 = math.tanh %30 : vector<8x64xf32>
    %cst_17 = arith.constant 1.000000e+00 : f32
    %32 = vector.broadcast %cst_17 : f32 to vector<8x64xf32>
    %33 = arith.subf %32, %26 : vector<8x64xf32>
    %34 = arith.mulf %33, %31 : vector<8x64xf32>
    %35 = arith.mulf %26, %1 : vector<8x64xf32>
    %36 = arith.addf %34, %35 : vector<8x64xf32>
    %37 = arith.truncf %36 : vector<8x64xf32> to vector<8x64xbf16>
    %c0_18 = arith.constant 0 : index
    %c0_19 = arith.constant 0 : index
    %38 = vector.load %arg8[%c0_18, %c0_19] : memref<64x16xbf16, #tpu.memory_space<vmem>>, vector<64x16xbf16>
    %cst_20 = arith.constant dense<0.000000e+00> : vector<8x16xf32>
    %39 = tpu.matmul %37, %38, %cst_20 {dimension_numbers = #tpu.dot_dimension_numbers<[1], [0], [0], [1], [0, 0, 1, 1], [], []>} : vector<8x64xbf16>, vector<64x16xbf16>, vector<8x16xf32> -> vector<8x16xf32>
    %c0_21 = arith.constant 0 : index
    %c0_22 = arith.constant 0 : index
    %40 = vector.load %arg9[%c0_21, %c0_22] : memref<1x16xf32, #tpu.memory_space<vmem>>, vector<1x16xf32>
    %41 = vector.broadcast %40 : vector<1x16xf32> to vector<8x16xf32>
    %42 = arith.addf %39, %41 : vector<8x16xf32>
    %c0_23 = arith.constant 0 : index
    %c0_24 = arith.constant 0 : index
    %43 = vector.load %arg10[%c0_23, %c0_24] : memref<8x16xf32, #tpu.memory_space<vmem>>, vector<8x16xf32>
    tpu.vector_store %arg10[%c0_23, %c0_24], %42 {strides = array<i32>} : memref<8x16xf32, #tpu.memory_space<vmem>>, vector<8x16xf32>,
    %c0_25 = arith.constant 0 : index
    %c0_26 = arith.constant 0 : index
    %44 = vector.load %arg11[%c0_25, %c0_26] : memref<8x64xf32, #tpu.memory_space<vmem>>, vector<8x64xf32>
    tpu.vector_store %arg11[%c0_25, %c0_26], %36 {strides = array<i32>} : memref<8x64xf32, #tpu.memory_space<vmem>>, vector<8x64xf32>,
    return
  }
  func.func @transform_0(%arg0: i32) -> (i32, i32) {
    %c0_i32 = arith.constant 0 : i32
    %c0_i32_0 = arith.constant 0 : i32
    return %arg0, %c0_i32 : i32, i32
  }
  func.func @transform_1(%arg0: i32) -> (i32, i32) {
    %c0_i32 = arith.constant 0 : i32
    %c0_i32_0 = arith.constant 0 : i32
    return %arg0, %c0_i32 : i32, i32
  }
  func.func @transform_2(%arg0: i32) -> (i32, i32) {
    %c0_i32 = arith.constant 0 : i32
    %c0_i32_0 = arith.constant 0 : i32
    %c0_i32_1 = arith.constant 0 : i32
    return %c0_i32, %c0_i32_0 : i32, i32
  }
  func.func @transform_3(%arg0: i32) -> (i32, i32) {
    %c0_i32 = arith.constant 0 : i32
    %c0_i32_0 = arith.constant 0 : i32
    %c0_i32_1 = arith.constant 0 : i32
    return %c0_i32, %c0_i32_0 : i32, i32
  }
  func.func @transform_4(%arg0: i32) -> (i32, i32) {
    %c0_i32 = arith.constant 0 : i32
    %c0_i32_0 = arith.constant 0 : i32
    %c0_i32_1 = arith.constant 0 : i32
    return %c0_i32, %c0_i32_0 : i32, i32
  }
  func.func @transform_5(%arg0: i32) -> (i32, i32) {
    %c0_i32 = arith.constant 0 : i32
    %c0_i32_0 = arith.constant 0 : i32
    %c0_i32_1 = arith.constant 0 : i32
    return %c0_i32, %c0_i32_0 : i32, i32
  }
  func.func @transform_6(%arg0: i32) -> (i32, i32) {
    %c0_i32 = arith.constant 0 : i32
    %c0_i32_0 = arith.constant 0 : i32
    %c0_i32_1 = arith.constant 0 : i32
    return %c0_i32, %c0_i32_0 : i32, i32
  }
  func.func @transform_7(%arg0: i32) -> (i32, i32) {
    %c0_i32 = arith.constant 0 : i32
    %c0_i32_0 = arith.constant 0 : i32
    %c0_i32_1 = arith.constant 0 : i32
    return %c0_i32, %c0_i32_0 : i32, i32
  }
  func.func @transform_8(%arg0: i32) -> (i32, i32) {
    %c0_i32 = arith.constant 0 : i32
    %c0_i32_0 = arith.constant 0 : i32
    %c0_i32_1 = arith.constant 0 : i32
    return %c0_i32, %c0_i32_0 : i32, i32
  }
  func.func @transform_9(%arg0: i32) -> (i32, i32) {
    %c0_i32 = arith.constant 0 : i32
    %c0_i32_0 = arith.constant 0 : i32
    return %arg0, %c0_i32 : i32, i32
  }
  func.func @transform_10(%arg0: i32) -> (i32, i32) {
    %c0_i32 = arith.constant 0 : i32
    %c0_i32_0 = arith.constant 0 : i32
    return %arg0, %c0_i32 : i32, i32
  }
}

</mosaic_0001>

<bundles_post_ra>
// kernel: tpu_custom_call.1
= control target key start
LH: loop header
LB: loop body
LE: loop exit
PB: predicated region body
PF: predicated region fallthrough
CT: control target
= control target key end

     0   :  { %16 = vsyncpa [#allocation3], 0  ;;  %s1337_s0 = inlined_call_operand.vmem [shape: bf16[8,128], index: 0, kind: input, shape index: {}]   ;;  %s1338_s1 = inlined_call_operand.vmem [shape: f32[8,64], index: 1, kind: input, shape index: {}]   ;;  %s1339_s2 = inlined_call_operand.hbm [shape: bf16[128,128], index: 2, kind: input, shape index: {}]   ;;  %s1340_s3 = inlined_call_operand.vmem [shape: f32[1,128], index: 3, kind: input, shape index: {}]   ;;  %s1341_s4 = inlined_call_operand.hbm [shape: bf16[128,512], index: 4, kind: input, shape index: {}]   ;;  %s1342_s5 = inlined_call_operand.hbm [shape: bf16[64,512], index: 5, kind: input, shape index: {}]   ;;  %s1343_s6 = inlined_call_operand.vmem [shape: f32[1,512], index: 6, kind: input, shape index: {}]   ;;  %s1344_s7 = inlined_call_operand.vmem [shape: bf16[64,16], index: 7, kind: input, shape index: {}]   ;;  %s1345_s8 = inlined_call_operand.vmem [shape: f32[1,16], index: 8, kind: input, shape index: {}]   ;;  %s1346_s9 = inlined_call_operand.hbm [shape: f32[8,16], index: 9, kind: output, shape index: {0}]   ;;  %s1347_s10 = inlined_call_operand.hbm [shape: f32[8,64], index: 10, kind: output, shape index: {1}]  }
   0x1   :  { %17 = vsyncpa [#allocation6], 0 }
   0x2   :  { %18 = vsyncpa [#allocation4], 0 }
   0x3   :  { %19 = vsyncpa [#allocation10], 0  ;;  %s1148_s13 = smov [#allocation5]   ;;  %s1030_s17 = scalar_lea.hbm %s1341_s4, 4096 }
   0x4   :  { %s43_s14 = sshll.u32 %s1148_s13, 4  ;;  %p1031_p0 = scmp.ne.s32.totalorder %s1341_s4, %s1030_s17  ;;  %s44_s14 = int_to_ptr.vmem [resolvable:$true] %s43_s14 }
   0x5   :  { %p1034_p1 = scmp.lt.u32.totalorder %s1030_s17, %s1341_s4 }
   0x7   :  { %p1036_p2 = pnand %p1034_p1, %p1031_p0 }
   0x9   :  { %1039 = shalt.err (!%p1036_p2)
}
   0xa   :  { %s1040_s22 = scalar_lea.vmem %s44_s14, 4096  ;;  %p1045_p4 = scmp.lt.s32.totalorder %s44_s14, %s44_s14 }
   0xb   :  { %p1041_p3 = scmp.ne.s32.totalorder %s44_s14, %s1040_s22  ;;  %p1046_p5 = scmp.lt.s32.totalorder %s1040_s22, %s1040_s22 }
   0xd   :  { %p1047_p6 = por %p1046_p5, %p1045_p4 }
   0xf   :  { %p1048_p7 = pnand %p1047_p6, %p1041_p3 }
  0x11   :  { %1051 = shalt.err (!%p1048_p7)
}
  0x12   :  { %s1149_s23 = smov 256   ;;  %s1150_s24 = smov 16  }
  0x13   :  { %49 = dma.hbm_to_vmem [thread:$0]  %s1341_s4, 4096, %s44_s14, [#allocation6], %s1149_s23, %s1149_s23, %s1150_s24  }
  0x14   :  { %s1151_s27 = smov [#allocation2]   ;;  %s1052_s11 = scalar_lea.hbm %s1339_s2, 1024 }
  0x15   :  { %s29_s28 = sshll.u32 %s1151_s27, 4  ;;  %p1053_p8 = scmp.ne.s32.totalorder %s1339_s2, %s1052_s11  ;;  %s30_s28 = int_to_ptr.vmem [resolvable:$true] %s29_s28 }
  0x16   :  { %p1056_p9 = scmp.lt.u32.totalorder %s1052_s11, %s1339_s2 }
  0x18   :  { %p1058_p10 = pnand %p1056_p9, %p1053_p8 }
  0x1a   :  { %1061 = shalt.err (!%p1058_p10)
}
  0x1b   :  { %s1062_s17 = scalar_lea.vmem %s30_s28, 1024  ;;  %p1067_p12 = scmp.lt.s32.totalorder %s30_s28, %s30_s28 }
  0x1c   :  { %p1063_p11 = scmp.ne.s32.totalorder %s30_s28, %s1062_s17  ;;  %p1068_p13 = scmp.lt.s32.totalorder %s1062_s17, %s1062_s17 }
  0x1e   :  { %p1069_p0 = por %p1068_p13, %p1067_p12 }
  0x20   :  { %p1070_p1 = pnand %p1069_p0, %p1063_p11 }
  0x22   :  { %1073 = shalt.err (!%p1070_p1)
}
  0x23   :  { %s1152_s4 = smov 64   ;;  %s1153_s14 = smov 4  }
  0x24   :  { %35 = dma.hbm_to_vmem [thread:$0]  %s1339_s2, 1024, %s30_s28, [#allocation3], %s1152_s4, %s1152_s4, %s1153_s14  }
  0x25   :  { %s1154_s20 = smov [#allocation7]   ;;  %s1074_s26 = scalar_lea.hbm %s1342_s5, 2048 }
  0x26   :  { %s55_s21 = sshll.u32 %s1154_s20, 4  ;;  %p1075_p2 = scmp.ne.s32.totalorder %s1342_s5, %s1074_s26  ;;  %s56_s21 = int_to_ptr.vmem [resolvable:$true] %s55_s21 }
  0x27   :  { %p1078_p3 = scmp.lt.u32.totalorder %s1074_s26, %s1342_s5 }
  0x29   :  { %p1080_p4 = pnand %p1078_p3, %p1075_p2 }
  0x2b   :  { %1083 = shalt.err (!%p1080_p4)
}
  0x2c   :  { %s1084_s12 = scalar_lea.vmem %s56_s21, 2048  ;;  %p1089_p6 = scmp.lt.s32.totalorder %s56_s21, %s56_s21 }
  0x2d   :  { %p1085_p5 = scmp.ne.s32.totalorder %s56_s21, %s1084_s12  ;;  %p1090_p7 = scmp.lt.s32.totalorder %s1084_s12, %s1084_s12 }
  0x2f   :  { %p1091_p8 = por %p1090_p7, %p1089_p6 }
  0x31   :  { %p1092_p9 = pnand %p1091_p8, %p1085_p5 }
  0x33   :  { %1095 = shalt.err (!%p1092_p9)
}
  0x34   :  { %61 = dma.hbm_to_vmem [thread:$0]  %s1342_s5, 2048, %s56_s21, [#allocation6], %s1149_s23, %s1149_s23, %s1150_s24  }
  0x35   :  { %1140 = dma.done.wait [#allocation3], 1024  }
  0x36   :  { %1141 = vsyncadd [#allocation3], 4294966272 }
  0x37   :  { %1142 = dma.done.wait [#allocation6], 6144  }
  0x38   :  { %1143 = vsyncadd [#allocation6], 4294961152  ;;  %v1155_v0 = vmov 0.0   ;;  %vm1156_vm0 = vmmov 0   ;;  %v1157_v1 = vmov 0   ;;  %v936_v2 = vld [vmem:[#allocation2] sm:$0xff]  }
  0x39   :  { %892 = vmatprep.subr.bf16.mxu0 %v1155_v0  ;;  %908 = vmatprep.mubr.msk.bf16.mxu0 %vm1156_vm0, %v1155_v0  ;;  %v937_v3 = vld [vmem:[#allocation2 + $0x8] sm:$0xff]   ;;  %v938_v4 = vld [vmem:[#allocation2 + $0x10] sm:$0xff]   ;;  %v939_v7 = vld [vmem:[#allocation2 + $0x18] sm:$0xff]   ;;  %vm322_vm1 = vcmask 523264  }
  0x3a   :  { %358 = vmatprep.mubr.bf16.mxu1 %v1157_v1  ;;  %893 = vmatpush3.bf16.msra.mxu0 %v936_v2  ;;  %v944_v5 = vld [vmem:[#allocation7 + $0x4] ss:$16 sps:$4 sm:$0xff]   ;;  %v946_v6 = vld [vmem:[#allocation7] ss:$16 sps:$4 sm:$0xff]   ;;  %v941_v14 = vld [vmem:[#allocation2 + $0x28] sm:$0xff]  }
  0x3b   :  { %894 = vmatprep.subr.bf16.mxu0 %v1155_v0  ;;  %v947_v8 = vld [vmem:[#allocation7 + $0x24] ss:$16 sps:$4 sm:$0xff]   ;;  %326 = vmatprep.subr.bf16.mxu1 %v944_v5  ;;  %v949_v9 = vld [vmem:[#allocation7 + $0x20] ss:$16 sps:$4 sm:$0xff]   ;;  %v958_v17 = vld [vmem:[#allocation7 + $0xc] ss:$16 sps:$4 sm:$0xff]  }
  0x3c   :  { %327 = vmatpush1.bf16.msra.mxu1 %v946_v6  ;;  %v950_v10 = vld [vmem:[#allocation7 + $0x44] ss:$16 sps:$4 sm:$0xff]   ;;  %v952_v12 = vld [vmem:[#allocation7 + $0x40] ss:$16 sps:$4 sm:$0xff]   ;;  %v956_v20 = vld [vmem:[#allocation7 + $0x8] ss:$16 sps:$4 sm:$0xff]  }
  0x3d   :  { %328 = vmatprep.subr.bf16.mxu1 %v947_v8  ;;  %v940_v11 = vld [vmem:[#allocation2 + $0x20] sm:$0xff]   ;;  %v942_v18 = vld [vmem:[#allocation2 + $0x30] sm:$0xff]   ;;  %v961_v21 = vld [vmem:[#allocation7 + $0x2c] ss:$16 sps:$4 sm:$0xff]  }
  0x3e   :  { %895 = vmatpush3.bf16.msra.mxu0 %v937_v3  ;;  %v953_v13 = vld [vmem:[#allocation7 + $0x64] ss:$16 sps:$4 sm:$0xff]   ;;  %v955_v15 = vld [vmem:[#allocation7 + $0x60] ss:$16 sps:$4 sm:$0xff]   ;;  %v943_v22 = vld [vmem:[#allocation2 + $0x38] sm:$0xff]  }
  0x3f   :  { %896 = vmatprep.subr.bf16.mxu0 %v1155_v0  ;;  %v1269_v16 = vld [vmem:[%s1338_s1] sm:$0xff]  ;;  %v959_v24 = vld [vmem:[#allocation7 + $0x28] ss:$16 sps:$4 sm:$0xff]   ;;  %v964_v26 = vld [vmem:[#allocation7 + $0x4c] ss:$16 sps:$4 sm:$0xff]  }
  0x40   :  { %329 = vmatpush1.bf16.msra.mxu1 %v949_v9  ;;  %v80_v19 = vpack.c.bf16 %v1269_v16, %v1269_v16  ;;  %v970_v23 = vld [vmem:[#allocation5 + $0x4] ss:$16 sps:$4 sm:$0xff]   ;;  %v78_v25 = vld [vmem:[%s1337_s0] sm:$0xf]  ;;  %v962_v29 = vld [vmem:[#allocation7 + $0x48] ss:$16 sps:$4 sm:$0xff]  }
  0x41   :  { %330 = vmatprep.subr.bf16.mxu1 %v950_v10  ;;  %v968_v27 = vld [vmem:[#allocation5] ss:$16 sps:$4 sm:$0xff]   ;;  %v976_v28 = vld [vmem:[#allocation5 + $0x24] ss:$16 sps:$4 sm:$0xff]   ;;  %v967_v30 = vld [vmem:[#allocation7 + $0x6c] ss:$16 sps:$4 sm:$0xff]  }
  0x42   :  { %897 = vmatpush3.bf16.msra.mxu0 %v938_v4  ;;  %v974_v31 = vld [vmem:[#allocation5 + $0x20] ss:$16 sps:$4 sm:$0xff]   ;;  %v982_v32 = vld [vmem:[#allocation5 + $0x44] ss:$16 sps:$4 sm:$0xff]   ;;  %v965_v33 = vld [vmem:[#allocation7 + $0x68] ss:$16 sps:$4 sm:$0xff]  }
  0x43   :  { %898 = vmatprep.subr.bf16.mxu0 %v1155_v0  ;;  %v973_v34 = vld [vmem:[#allocation5 + $0xc] ss:$16 sps:$4 sm:$0xff]   ;;  %v980_v35 = vld [vmem:[#allocation5 + $0x40] ss:$16 sps:$4 sm:$0xff]   ;;  %v971_v36 = vld [vmem:[#allocation5 + $0x8] ss:$16 sps:$4 sm:$0xff]  }
  0x44   :  { %331 = vmatpush1.bf16.msra.mxu1 %v952_v12  ;;  %v988_v37 = vld [vmem:[#allocation5 + $0x64] ss:$16 sps:$4 sm:$0xff]   ;;  %v979_v38 = vld [vmem:[#allocation5 + $0x2c] ss:$16 sps:$4 sm:$0xff]   ;;  %v986_v39 = vld [vmem:[#allocation5 + $0x60] ss:$16 sps:$4 sm:$0xff]  }
  0x45   :  { %332 = vmatprep.subr.bf16.mxu1 %v953_v13  ;;  %v994_v40 = vld [vmem:[#allocation5 + $0x84] ss:$16 sps:$4 sm:$0xff]   ;;  %v977_v41 = vld [vmem:[#allocation5 + $0x28] ss:$16 sps:$4 sm:$0xff]   ;;  %v985_v42 = vld [vmem:[#allocation5 + $0x4c] ss:$16 sps:$4 sm:$0xff]  }
  0x46   :  { %899 = vmatpush3.bf16.msra.mxu0 %v939_v7  ;;  %v992_v43 = vld [vmem:[#allocation5 + $0x80] ss:$16 sps:$4 sm:$0xff]   ;;  %v1000_v44 = vld [vmem:[#allocation5 + $0xa4] ss:$16 sps:$4 sm:$0xff]   ;;  %v983_v45 = vld [vmem:[#allocation5 + $0x48] ss:$16 sps:$4 sm:$0xff]  }
  0x47   :  { %900 = vmatprep.subr.bf16.mxu0 %v1155_v0  ;;  %v991_v46 = vld [vmem:[#allocation5 + $0x6c] ss:$16 sps:$4 sm:$0xff]   ;;  %v998_v47 = vld [vmem:[#allocation5 + $0xa0] ss:$16 sps:$4 sm:$0xff]   ;;  %v1006_v48 = vld [vmem:[#allocation5 + $0xc4] ss:$16 sps:$4 sm:$0xff]  }
  0x48   :  { %333 = vmatpush1.bf16.msra.mxu1 %v955_v15  ;;  %v989_v49 = vld [vmem:[#allocation5 + $0x68] ss:$16 sps:$4 sm:$0xff]   ;;  %v997_v50 = vld [vmem:[#allocation5 + $0x8c] ss:$16 sps:$4 sm:$0xff]   ;;  %v1004_v51 = vld [vmem:[#allocation5 + $0xc0] ss:$16 sps:$4 sm:$0xff]  }
  0x49   :  { %367 = vmatprep.subr.bf16.mxu1 %v958_v17  ;;  %v995_v52 = vld [vmem:[#allocation5 + $0x88] ss:$16 sps:$4 sm:$0xff]   ;;  %v1003_v53 = vld [vmem:[#allocation5 + $0xac] ss:$16 sps:$4 sm:$0xff]   ;;  %v1012_v57 = vld [vmem:[#allocation5 + $0xe4] ss:$16 sps:$4 sm:$0xff]  }
  0x4a   :  { %901 = vmatpush3.bf16.msra.mxu0 %v940_v11  ;;  %v1001_v54 = vld [vmem:[#allocation5 + $0xa8] ss:$16 sps:$4 sm:$0xff]   ;;  %v1009_v55 = vld [vmem:[#allocation5 + $0xcc] ss:$16 sps:$4 sm:$0xff]   ;;  %v1010_v59 = vld [vmem:[#allocation5 + $0xe0] ss:$16 sps:$4 sm:$0xff]  }
  0x4b   :  { %902 = vmatprep.subr.bf16.mxu0 %v1155_v0  ;;  %836 = vmatmul.mubr.msk.bf16.vlgmr.msra.gmra.mrb[0].mxu1 %vm322_vm1, %v80_v19  ;;  %v1007_v56 = vld [vmem:[#allocation5 + $0xc8] ss:$16 sps:$4 sm:$0xff]   ;;  %v1015_v58 = vld [vmem:[#allocation5 + $0xec] ss:$16 sps:$4 sm:$0xff]   ;;  %v811_v2 = vld [vmem:[%s1340_s3] ss:$0 sm:$0xff] }
  0x4c   :  { %368 = vmatpush1.bf16.msra.mxu1 %v956_v20  ;;  %399 = vmatprep.mubr.bf16.mxu1 %v1157_v1  ;;  %v1013_v60 = vld [vmem:[#allocation5 + $0xe8] ss:$16 sps:$4 sm:$0xff]   ;;  %v1018_v17 = vld [vmem:[%s1344_s7 + $0x10] sm:$0xff]  }
  0x4d   :  { %369 = vmatprep.subr.bf16.mxu1 %v961_v21  ;;  %v1017_v15 = vld [vmem:[%s1344_s7 + $0x8] sm:$0xff]  }
  0x4e   :  { %903 = vmatpush3.bf16.msra.mxu0 %v941_v14  ;;  %v1016_v14 = vld [vmem:[%s1344_s7] sm:$0xff]  }
  0x4f   :  { %904 = vmatprep.subr.bf16.mxu0 %v1155_v0 }
  0x50   :  { %370 = vmatpush1.bf16.msra.mxu1 %v959_v24 }
  0x51   :  { %371 = vmatprep.subr.bf16.mxu1 %v964_v26 }
  0x52   :  { %905 = vmatpush3.bf16.msra.mxu0 %v942_v18  ;;  %v1019_v18 = vld [vmem:[%s1344_s7 + $0x18] sm:$0xff]  }
  0x53   :  { %906 = vmatprep.subr.bf16.mxu0 %v1155_v0 }
  0x54   :  { %372 = vmatpush1.bf16.msra.mxu1 %v962_v29 }
  0x55   :  { %373 = vmatprep.subr.bf16.mxu1 %v967_v30 }
  0x56   :  { %907 = vmatpush3.bf16.msra.mxu0 %v943_v22  ;;  %v650_v22 = vld [vmem:[%s1343_s6] sm:$0xf]  ;;  %s1158_s6 = smov [#allocation9]  }
  0x57   :  { %568 = vmatprep.subr.bf16.mxu0 %v970_v23  ;;  %s797_s7 = sshll.u32 %s1158_s6, 4  ;;  %s798_s7 = int_to_ptr.vmem [resolvable:$true] %s797_s7 }
  0x58   :  { %374 = vmatpush1.bf16.msra.mxu1 %v965_v33  ;;  %s1096_s22 = scalar_lea.vmem %s798_s7, 128  ;;  %p1101_p11 = scmp.lt.s32.totalorder %s798_s7, %s798_s7 }
  0x59   :  { %909 = vmatmul.mubr.bf16.vlgmr.msra.gmra.mrb[0].mxu0 %v78_v25  ;;  %609 = vmatprep.subr.bf16.mxu1 %v973_v34  ;;  %p1097_p10 = scmp.ne.s32.totalorder %s798_s7, %s1096_s22  ;;  %p1102_p12 = scmp.lt.s32.totalorder %s1096_s22, %s1096_s22 }
  0x5a   :  { %569 = vmatpush1.bf16.msra.mxu0 %v968_v27  ;;  %600 = vmatprep.mubr.bf16.mxu0 %v1157_v1 }
  0x5b   :  { %570 = vmatprep.subr.bf16.mxu0 %v976_v28  ;;  %837 = vmatmul.mubr.msk.bf16.vlgmr.msra.gmra.mrb[4].mxu1 %vm322_vm1, %v80_v19  ;;  %v652_v19 = vlaneseq  ;;  %p1103_p13 = por %p1102_p12, %p1101_p11 }
  0x5c   :  { %610 = vmatpush1.bf16.msra.mxu1 %v971_v36  ;;  %641 = vmatprep.mubr.bf16.mxu1 %v1157_v1 }
  0x5d   :  { %611 = vmatprep.subr.bf16.mxu1 %v979_v38  ;;  %v653_v20 = vshrl.u32 %v652_v19, 7  ;;  %p1104_p0 = pnand %p1103_p13, %p1097_p10 }
  0x5e   :  { %571 = vmatpush1.bf16.msra.mxu0 %v974_v31 }
  0x5f   :  { %572 = vmatprep.subr.bf16.mxu0 %v982_v32  ;;  %v654_v21 = vsub.s32 0, %v653_v20  ;;  %v658_v23 = vsub.s32 1, %v653_v20 }
  0x60   :  { %612 = vmatpush1.bf16.msra.mxu1 %v977_v41 }
  0x61   :  { %613 = vmatprep.subr.bf16.mxu1 %v985_v42  ;;  %v655_v24 = vrot.slane %v650_v22, %v654_v21  ;;  %v659_v32 = vrot.slane %v650_v22, %v658_v23 }
  0x62   :  { %573 = vmatpush1.bf16.msra.mxu0 %v980_v35 }
  0x63   :  { %574 = vmatprep.subr.bf16.mxu0 %v988_v37 }
  0x64   :  { %614 = vmatpush1.bf16.msra.mxu1 %v983_v45 }
  0x65   :  { %615 = vmatprep.subr.bf16.mxu1 %v991_v46 }
  0x66   :  { %575 = vmatpush1.bf16.msra.mxu0 %v986_v39 }
  0x67   :  { %576 = vmatprep.subr.bf16.mxu0 %v994_v40 }
  0x68   :  { %616 = vmatpush1.bf16.msra.mxu1 %v989_v49 }
  0x69   :  { %617 = vmatprep.subr.bf16.mxu1 %v997_v50 }
  0x6a   :  { %577 = vmatpush1.bf16.msra.mxu0 %v992_v43  ;;  %v666_v43 = vsub.s32 3, %v653_v20 }
  0x6b   :  { %578 = vmatprep.subr.bf16.mxu0 %v1000_v44  ;;  %v662_v44 = vsub.s32 2, %v653_v20 }
  0x6c   :  { %618 = vmatpush1.bf16.msra.mxu1 %v995_v52  ;;  %v667_v46 = vrot.slane %v650_v22, %v666_v43 }
  0x6d   :  { %619 = vmatprep.subr.bf16.mxu1 %v1003_v53 }
  0x6e   :  { %579 = vmatpush1.bf16.msra.mxu0 %v998_v47  ;;  %v663_v47 = vrot.slane %v650_v22, %v662_v44 }
  0x6f   :  { %580 = vmatprep.subr.bf16.mxu0 %v1006_v48 }
  0x70   :  { %620 = vmatpush1.bf16.msra.mxu1 %v1001_v54 }
  0x71   :  { %621 = vmatprep.subr.bf16.mxu1 %v1009_v55 }
  0x72   :  { %581 = vmatpush1.bf16.msra.mxu0 %v1004_v51 }
  0x73   :  { %582 = vmatprep.subr.bf16.mxu0 %v1012_v57 }
  0x74   :  { %622 = vmatpush1.bf16.msra.mxu1 %v1007_v56 }
  0x75   :  { %623 = vmatprep.subr.bf16.mxu1 %v1015_v58 }
  0x76   :  { %583 = vmatpush1.bf16.msra.mxu0 %v1010_v59 }
  0x77   :  { %912 = vmatprep.subr.bf16.mxu0 %v1155_v0 }
  0x78   :  { %624 = vmatpush1.bf16.msra.mxu1 %v1013_v60 }
 0x11e   :  { %v360_v61 = vpop.f32.mrb[0].mxu1 }
 0x11f   :  { %v362_v62 = vpop.f32.mrb[1].mxu1 }
 0x120   :  { %v364_v63 = vpop.f32.mrb[2].mxu1 }
 0x121   :  { %v365_v1 = vpop.f32.mrb[3].mxu1 }
 0x12c   :  { %v186_v3 = vpop.f32.mrb[0].mxu0 }
 0x12d   :  { %v187_v4 = vadd.f32 %v811_v2, %v186_v3  ;;  %v910_v5 = vpop.f32.mrb[1].mxu0 }
 0x12e   :  { %v189_v6 = vpop.f32.mrb[2].mxu0  ;;  %v401_v10 = vpop.f32.mrb[4].mxu1 }
 0x12f   :  { %v192_v7 = vmax.f32 %v187_v4, 0.0  ;;  %v911_v8 = vpop.f32.mrb[3].mxu0  ;;  %v403_v11 = vpop.f32.mrb[5].mxu1 }
 0x130   :  { %v405_v12 = vpop.f32.mrb[6].mxu1 }
 0x131   :  { %v193_v9 = vpack.c.bf16 %v192_v7, %v192_v7  ;;  %v406_v13 = vpop.f32.mrb[7].mxu1 }
 0x133   :  { %601 = vmatmul.mubr.bf16.vlgmr.msra.gmra.mrb[4].mxu0 %v193_v9  ;;  %642 = vmatmul.mubr.bf16.vlgmr.msra.gmra.mrb[8].mxu1 %v193_v9 }
 0x134   :  { %920 = vmatprep.mubr.msk.bf16.mxu0 %vm1156_vm0, %v1155_v0  ;;  %913 = vmatpush3.bf16.msra.mxu0 %v1016_v14 }
 0x135   :  { %914 = vmatprep.subr.bf16.mxu0 %v1155_v0 }
 0x138   :  { %915 = vmatpush3.bf16.msra.mxu0 %v1017_v15 }
 0x139   :  { %916 = vmatprep.subr.bf16.mxu0 %v1155_v0 }
 0x13c   :  { %917 = vmatpush3.bf16.msra.mxu0 %v1018_v17 }
 0x13d   :  { %918 = vmatprep.subr.bf16.mxu0 %v1155_v0 }
 0x140   :  { %919 = vmatpush3.bf16.msra.mxu0 %v1019_v18 }
 0x206   :  { %v602_v25 = vpop.f32.mrb[4].mxu0  ;;  %v643_v26 = vpop.f32.mrb[8].mxu1 }
 0x207   :  { %v603_v27 = vadd.f32 %v602_v25, %v360_v61  ;;  %v644_v28 = vadd.f32 %v643_v26, %v401_v10  ;;  %v604_v29 = vpop.f32.mrb[5].mxu0  ;;  %v645_v30 = vpop.f32.mrb[9].mxu1 }
 0x208   :  { %v605_v31 = vadd.f32 %v604_v29, %v362_v62  ;;  %v646_v33 = vadd.f32 %v645_v30, %v403_v11  ;;  %v606_v0 = vpop.f32.mrb[6].mxu0  ;;  %v647_v34 = vpop.f32.mrb[10].mxu1 }
 0x209   :  { %v672_v35 = vadd.f32 %v655_v24, %v603_v27  ;;  %v607_v36 = vpop.f32.mrb[7].mxu0  ;;  %v648_v37 = vpop.f32.mrb[11].mxu1  ;;  %v674_v51 = vadd.f32 %v663_v47, %v644_v28 }
 0x20a   :  { %v673_v39 = vadd.f32 %v659_v32, %v605_v31  ;;  %v675_v49 = vadd.f32 %v667_v46, %v646_v33 }
 0x20b   :  { %v870_v38 = vmul.f32 -1.442695, %v672_v35 }
 0x20c   :  { %v871_v40 = vmul.f32 -1.442695, %v673_v39 }
 0x20d   :  { %1020 = vpow2.f32 %v870_v38 }
 0x20e   :  { %1022 = vpow2.f32 %v871_v40 }
 0x217   :  { %v1021_v41 = vpop.eup %1020 }
 0x218   :  { %v682_v42 = vadd.f32 1.0, %v1021_v41  ;;  %v1023_v45 = vpop.eup %1022 }
 0x219   :  { %v683_v48 = vadd.f32 1.0, %v1023_v45 }
 0x21a   :  { %1024 = vrcp.f32 %v682_v42 }
 0x21b   :  { %1026 = vrcp.f32 %v683_v48 }
 0x224   :  { %v1025_v50 = vpop.eup %1024 }
 0x225   :  { %v688_v52 = vmul.f32 %v1025_v50, %v675_v49  ;;  %v1027_v54 = vpop.eup %1026 }
 0x226   :  { %v691_v55 = vsub.f32 1.0, %v1027_v54  ;;  %v693_v58 = vmul.f32 %v1027_v54, %v1269_v16 }
 0x227   :  { %v689_v53 = vadd.f32 %v688_v52, %v674_v51 }
 0x229   :  { %1028 = vtanh.f32 %v689_v53 }
 0x233   :  { %v1029_v56 = vpop.eup %1028 }
 0x234   :  { %v692_v57 = vmul.f32 %v1029_v56, %v691_v55 }
 0x236   :  { %v694_v59 = vadd.f32 %v693_v58, %v692_v57 }
 0x238   :  { %v695_v60 = vpack.c.bf16 %v694_v59, %v694_v59  ;;  %780 = vst.msk [vmem:[#allocation9] sm:$0xff] %vm322_vm1, %v694_v59 }
 0x23a   :  { %921 = vmatmul.mubr.msk.bf16.vlgmr.msra.gmra.mrb[8].mxu0 %vm322_vm1, %v695_v60 }
 0x23b   :  { %1107 = shalt.err (!%p1104_p0)
}
 0x23c   :  { %s1108_s27 = scalar_lea.hbm %s1347_s10, 128 }
 0x23d   :  { %p1109_p1 = scmp.ne.s32.totalorder %s1347_s10, %s1108_s27  ;;  %p1112_p2 = scmp.lt.u32.totalorder %s1108_s27, %s1347_s10 }
 0x23f   :  { %p1114_p3 = pnand %p1112_p2, %p1109_p1 }
 0x241   :  { %1117 = shalt.err (!%p1114_p3)
}
 0x242   :  { %800 = dma.vmem_to_hbm [thread:$0]  %s798_s7, 128, %s1347_s10, [#allocation10]   ;;  %v872_v16 = vld [vmem:[%s1345_s8] ss:$0 sm:$0xff]  ;;  %vm778_vm2 = vcmask 130048  }
 0x243   :  { %s1159_s1 = smov [#allocation8]  }
 0x244   :  { %s787_s24 = sshll.u32 %s1159_s1, 4  ;;  %s788_s24 = int_to_ptr.vmem [resolvable:$true] %s787_s24 }
 0x245   :  { %s1118_s0 = scalar_lea.vmem %s788_s24, 128  ;;  %p1123_p5 = scmp.lt.s32.totalorder %s788_s24, %s788_s24 }
 0x246   :  { %p1119_p4 = scmp.ne.s32.totalorder %s788_s24, %s1118_s0  ;;  %p1124_p6 = scmp.lt.s32.totalorder %s1118_s0, %s1118_s0 }
 0x248   :  { %p1125_p7 = por %p1124_p6, %p1123_p5 }
 0x24a   :  { %p1126_p8 = pnand %p1125_p7, %p1119_p4 }
 0x30d   :  { %v772_v61 = vpop.f32.mrb[8].mxu0 }
 0x30e   :  { %v773_v62 = vadd.f32 %v872_v16, %v772_v61  ;;  %v922_v63 = vpop.f32.mrb[9].mxu0 }
 0x30f   :  { %v775_v1 = vpop.f32.mrb[10].mxu0 }
 0x310   :  { %v923_v2 = vpop.f32.mrb[11].mxu0  ;;  %779 = vst.msk [vmem:[#allocation8] sm:$0xff] %vm778_vm2, %v773_v62 }
 0x311   :  { %1129 = shalt.err (!%p1126_p8)
}
 0x312   :  { %s1130_s8 = scalar_lea.hbm %s1346_s9, 128 }
 0x313   :  { %p1131_p9 = scmp.ne.s32.totalorder %s1346_s9, %s1130_s8  ;;  %p1134_p10 = scmp.lt.u32.totalorder %s1130_s8, %s1346_s9 }
 0x315   :  { %p1136_p11 = pnand %p1134_p10, %p1131_p9 }
 0x317   :  { %1139 = shalt.err (!%p1136_p11)
}
 0x318   :  { %790 = dma.vmem_to_hbm [thread:$0]  %s788_s24, 128, %s1346_s9, [#allocation4]  }
 0x319   :  { %1144 = dma.done.wait [#allocation4], 128  }
 0x31a   :  { %1145 = vsyncadd [#allocation4], 4294967168 }
 0x31b   :  { %1146 = dma.done.wait [#allocation10], 128  }
 0x31c   :  { %1147 = vsyncadd [#allocation10], 4294967168 }
 0x31d   :  { %807 = vsyncpa [#allocation3], 1 }
 0x31e   :  { %808 = vsyncpa [#allocation6], 1 }
 0x31f   :  { %809 = vsyncpa [#allocation4], 1 }
 0x320   :  { %810 = vsyncpa [#allocation10], 1 }

</bundles_post_ra>
